<compile_context>
chip_gen: v5e
topology: v5e:2x2
jax: 0.10.0
libtpu: 0.0.40
codegen_flags: <defaults>
</compile_context>

<pallas_src>
import numpy as np
import jax
import jax.numpy as jnp
from jax.experimental import pallas as pl
from jax.experimental.pallas import tpu as pltpu

# ------------------------- architecture config (small) -----------------------
M = 2            # ferns per layer
K = 4            # bit functions per fern  -> 2^K = 16 words
L = 3            # patch size for bit functions (valid, like a 3x3 conv)
D_OUT = 8        # voting-table output channels per layer
POOL = 2         # AvgPool2d kernel_size (stride = 1)
TEMP = 0.5       # soft-bit temperature
INV_TEMP = 1.0 / TEMP
TWO_K = 1 << K
NUM_LAYERS = 4
C_IN0 = 4        # input channels
MAX_C = max(C_IN0, D_OUT)   # rows of the resident frame buffer


# ------------------------- pltpu.roll direction probe -------------------------
_ROLL_NUMPY_STYLE = None


def _roll_is_numpy_style():
    """One-off probe: does pltpu.roll follow jnp.roll's sign convention?

    Runs a tiny kernel once (outside jit) so the stencil shifts below are
    correct regardless of the rotate sign convention of the installed jax.
    """
    global _ROLL_NUMPY_STYLE
    if _ROLL_NUMPY_STYLE is None:
        def probe(x_ref, o_ref):
            o_ref[...] = pltpu.roll(x_ref[...], 1, axis=1)

        x = jnp.tile(jax.lax.iota(jnp.float32, 128)[None, :], (8, 1))
        y = pl.pallas_call(
            probe, out_shape=jax.ShapeDtypeStruct((8, 128), jnp.float32))(x)
        # jnp.roll style: out[0] == in[-1] == 127 ; opposite style: out[0] == 1
        _ROLL_NUMPY_STYLE = bool(np.asarray(y)[0, 0] == 127.0)
    return _ROLL_NUMPY_STYLE


# ------------------------- fused 4-layer CTE kernel ---------------------------
def _build_cte_kernel(idx_layers, w0, npb, roll_numpy):
    """Builds the fused kernel.

    idx_layers: static python ints, per layer (M, K, 6) = (c1, c2, dy1, dx1, dy2, dx2)
    w0:         frame width (row stride inside a flattened image frame)
    npb:        lanes per batch tile = n_block * H0 * W0 (multiple of 128 here)
    roll_numpy: result of the roll-direction probe
    """

    def shift_amt(off):
        # rotation amount such that rolled[..., j] == x[..., (j + off) % npb]
        off %= npb
        if off == 0:
            return 0
        return (npb - off) if roll_numpy else off

    def shifted_row(buf, c, off):
        row = buf[pl.ds(c, 1), :]                 # (1, NPB) aligned row load
        amt = shift_amt(off)
        if amt == 0:
            return row
        # XLU lane rotation; wrap-around only reaches invalid frame positions.
        return pltpu.roll(row, amt, axis=1)

    def shifted_block(v, off):
        amt = shift_amt(off)
        if amt == 0:
            return v
        return pltpu.roll(v, amt, axis=1)

    def kernel(x0_ref, thr_ref, tbl_ref, out_ref, xbuf):
        # x0_ref: (MAX_C, NPB) flattened input frames (channels zero-padded)
        # thr_ref: (NUM_LAYERS*M*K,) thresholds in SMEM
        # tbl_ref: (NUM_LAYERS*D_OUT, M*TWO_K) fern-fused voting tables
        # out_ref: (D_OUT, NPB) final frames (valid region extracted outside)
        # xbuf:    (MAX_C, NPB) VMEM-resident current-layer activations

        # word-code constants: factor c ? b : (1-b) == (2c-1)*b + (1-c)  (FMA)
        word = jax.lax.broadcasted_iota(jnp.int32, (TWO_K, 1), 0)
        code_a, code_off = [], []
        for kk in range(K):
            cbit = (jnp.bitwise_and(word, 1 << kk) > 0).astype(jnp.float32)
            code_a.append(2.0 * cbit - 1.0)
            code_off.append(1.0 - cbit)

        xbuf[...] = x0_ref[...]                   # lane-dense full store

        for li in range(NUM_LAYERS):
            idx = idx_layers[li]
            # ---- FernBitWord (soft bits) + word probabilities ----
            fern_probs = []
            for mm in range(M):
                prob = None
                for kk in range(K):
                    c1, c2, dy1, dx1, dy2, dx2 = idx[mm][kk]
                    p1 = shifted_row(xbuf, c1, dy1 * w0 + dx1)
                    p2 = shifted_row(xbuf, c2, dy2 * w0 + dx2)
                    r = (li * M + mm) * K + kk
                    logit = (p1 - p2 - thr_ref[r]) * INV_TEMP
                    # sigmoid via tanh (EUP), avoids an exact vector divide
                    b = 0.5 * (jnp.tanh(0.5 * logit) + 1.0)      # (1, NPB)
                    f = b * code_a[kk] + code_off[kk]            # (TWO_K, NPB)
                    prob = f if prob is None else prob * f
                fern_probs.append(prob)
            prob_all = jnp.concatenate(fern_probs, axis=0)       # (M*2^K, NPB)

            # ---- FernSparseTable (dense soft voting): one MXU dot ----
            tbl = tbl_ref[pl.ds(li * D_OUT, D_OUT), :]           # (D_OUT, M*2^K)
            votes = jnp.dot(tbl, prob_all,
                            preferred_element_type=jnp.float32)  # (D_OUT, NPB)

            # ---- AvgPool2d(POOL, stride=1) on the flat frames ----
            acc = votes
            for dy in range(POOL):
                for dx in range(POOL):
                    off = dy * w0 + dx
                    if off == 0:
                        continue
                    acc = acc + shifted_block(votes, off)
            xbuf[pl.ds(0, D_OUT), :] = acc * (1.0 / (POOL * POOL))

        out_ref[...] = xbuf[pl.ds(0, D_OUT), :]

    return kernel


def _pick_batch_tile(n, hw, target_lanes=2048):
    """Largest divisor of n whose tile stays within ~target_lanes lanes.

    Big tiles amortise per-grid-step overhead; batches > target still produce
    >= 2 independent "parallel" tiles so both v7x TensorCores get work.
    """
    nb = 1
    for d in range(1, n + 1):
        if n % d == 0 and d * hw <= target_lanes:
            nb = d
    return nb


# ------------------------- forward (one pallas_call) --------------------------
def cte_forward(x_nchw, params):
    n, c0, h0, w0 = x_nchw.shape
    hw = h0 * w0
    nb = _pick_batch_tile(n, hw)
    t = n // nb
    npb = nb * hw                                  # 256 * nb -> multiple of 128

    # (N,C,H,W) -> (T, MAX_C, nb*H*W): frames flattened onto lanes, channels
    # zero-padded to MAX_C so the kernel only does full, unmasked stores.
    x = x_nchw.astype(jnp.float32).reshape(t, nb, c0, hw)
    x = jnp.transpose(x, (0, 2, 1, 3)).reshape(t, c0, npb)
    x = jnp.pad(x, ((0, 0), (0, MAX_C - c0), (0, 0)))

    kernel = _build_cte_kernel(params["idx"], w0, npb, params["roll_numpy"])
    out = pl.pallas_call(
        kernel,
        out_shape=jax.ShapeDtypeStruct((t, D_OUT, npb), jnp.float32),
        grid=(t,),
        in_specs=[
            pl.BlockSpec((None, MAX_C, npb), lambda i: (i, 0, 0)),
            pl.BlockSpec(memory_space=pltpu.MemorySpace.SMEM),
            pl.BlockSpec((NUM_LAYERS * D_OUT, M * TWO_K), lambda i: (0, 0)),
        ],
        out_specs=pl.BlockSpec((None, D_OUT, npb), lambda i: (i, 0, 0)),
        scratch_shapes=[pltpu.VMEM((MAX_C, npb), jnp.float32)],
        compiler_params=pltpu.CompilerParams(
            dimension_semantics=("parallel",)),
    )(x, params["thr"], params["table"])

    # Extract the valid region of the final frames and flatten like x.view(N,-1)
    shrink = NUM_LAYERS * ((L - 1) + (POOL - 1))
    hf, wf = h0 - shrink, w0 - shrink
    out = out.reshape(t, D_OUT, nb, h0, w0)
    out = jnp.transpose(out, (0, 2, 1, 3, 4)).reshape(n, D_OUT, h0, w0)
    out = out[:, :, :hf, :wf]
    return out.reshape(n, D_OUT * hf * wf)


# ------------------------- pure-JAX reference (no Pallas) ---------------------
def cte_forward_ref(x_nchw, params):
    x = jnp.transpose(x_nchw, (1, 0, 2, 3)).astype(jnp.float32)   # (C, N, H, W)
    thr = params["thr"].reshape(NUM_LAYERS, M, K)
    tbl = params["table"].reshape(NUM_LAYERS, D_OUT, M * TWO_K)
    word = np.arange(TWO_K)
    for li in range(NUM_LAYERS):
        idx = params["idx"][li]
        _, n, h, w = x.shape
        ho, wo = h - L + 1, w - L + 1
        probs = []
        for mm in range(M):
            prob = jnp.ones((TWO_K, n, ho, wo), jnp.float32)
            for kk in range(K):
                c1, c2, dy1, dx1, dy2, dx2 = idx[mm][kk]
                p1 = x[c1, :, dy1:dy1 + ho, dx1:dx1 + wo]
                p2 = x[c2, :, dy2:dy2 + ho, dx2:dx2 + wo]
                b = jax.nn.sigmoid((p1 - p2 - thr[li, mm, kk]) * INV_TEMP)
                c = ((word >> kk) & 1).astype(np.float32)[:, None, None, None]
                prob = prob * (c * b[None] + (1.0 - c) * (1.0 - b[None]))
            probs.append(prob)
        prob_all = jnp.concatenate(probs, axis=0)                 # (M*2^K,N,ho,wo)
        votes = jnp.einsum('dw,wnyx->dnyx', tbl[li], prob_all,
                           precision=jax.lax.Precision.HIGHEST)
        hp, wp = ho - POOL + 1, wo - POOL + 1
        acc = jnp.zeros((D_OUT, n, hp, wp), jnp.float32)
        for dy in range(POOL):
            for dx in range(POOL):
                acc = acc + votes[:, :, dy:dy + hp, dx:dx + wp]
        x = acc * (1.0 / (POOL * POOL))
    out = jnp.transpose(x, (1, 0, 2, 3))
    return out.reshape(out.shape[0], -1)


# ------------------------- deterministic parameter init -----------------------
def init_params():
    rng = np.random.RandomState(0)
    idx_layers, thr_all, tbl_all = [], [], []
    c_in = C_IN0
    for _ in range(NUM_LAYERS):
        idx = np.stack(
            [rng.randint(0, c_in, (M, K)),   # channel of point 1
             rng.randint(0, c_in, (M, K)),   # channel of point 2
             rng.randint(0, L, (M, K)),      # dy1
             rng.randint(0, L, (M, K)),      # dx1
             rng.randint(0, L, (M, K)),      # dy2
             rng.randint(0, L, (M, K))],     # dx2
            axis=-1)                          # (M, K, 6)
        idx_layers.append(tuple(tuple(tuple(int(v) for v in idx[m, k])
                                      for k in range(K)) for m in range(M)))
        thresh = (rng.randn(M, K) * 0.1).astype(np.float32)
        table = (rng.randn(M, TWO_K, D_OUT) * 0.1).astype(np.float32)
        # fern-fused, output-major voting table: (D_OUT, M*2^K), col = m*2^K + w
        table_t = np.transpose(table, (2, 0, 1)).reshape(D_OUT, M * TWO_K)
        thr_all.append(thresh.reshape(-1))
        tbl_all.append(table_t)
        c_in = D_OUT
    return {
        "idx": tuple(idx_layers),
        "thr": jnp.asarray(np.concatenate(thr_all, axis=0)),        # (32,)
        "table": jnp.asarray(np.concatenate(tbl_all, axis=0)),      # (32, 32)
        "roll_numpy": _roll_is_numpy_style(),                       # probe (eager)
    }


# ------------------------- run ------------------------------------------------
if __name__ == "__main__":
    params = init_params()
    key = jax.random.PRNGKey(0)
    x = jax.random.normal(key, (2, C_IN0, 16, 16), dtype=jnp.float32)  # NCHW

    fwd = jax.jit(lambda inp: cte_forward(inp, params))
    out = jax.block_until_ready(fwd(x))

    # shape trace: 16 ->(L=3) 14 ->pool 13 ->11 ->10 ->8 ->7 ->5 ->4 ; D_out=8
    shrink = NUM_LAYERS * ((L - 1) + (POOL - 1))
    hf = 16 - shrink
    assert out.shape == (2, D_OUT * hf * hf), out.shape
    assert bool(jnp.all(jnp.isfinite(out)))

    # validate the fused kernel against a pure-JAX reference
    ref = jax.block_until_ready(
        jax.jit(lambda inp: cte_forward_ref(inp, params))(x))
    np.testing.assert_allclose(np.asarray(out), np.asarray(ref),
                               rtol=2e-2, atol=2e-3)
    print("KERNEL_OK")
</pallas_src>

<mosaic_0001>
module attributes {stable_mosaic.version = 11 : i64} {
  func.func @probe(%arg0: memref<8x128xf32, #tpu.memory_space<vmem>>, %arg1: memref<8x128xf32, #tpu.memory_space<vmem>>) attributes {dimension_semantics = [], scalar_prefetch = 0 : i64, scratch_operands = 0 : i64, tpu.core_type = #tpu.core_type<tc>} {
    %c0 = arith.constant 0 : index
    %c0_0 = arith.constant 0 : index
    %0 = vector.load %arg0[%c0, %c0_0] : memref<8x128xf32, #tpu.memory_space<vmem>>, vector<8x128xf32>
    %c1_i32 = arith.constant 1 : i32
    %1 = tpu.dynamic_rotate %0 by %c1_i32 dim 1 : vector<8x128xf32>, i32 -> vector<8x128xf32>
    %c0_1 = arith.constant 0 : index
    %c0_2 = arith.constant 0 : index
    %2 = vector.load %arg1[%c0_1, %c0_2] : memref<8x128xf32, #tpu.memory_space<vmem>>, vector<8x128xf32>
    tpu.vector_store %arg1[%c0_1, %c0_2], %1 {strides = array<i32>} : memref<8x128xf32, #tpu.memory_space<vmem>>, vector<8x128xf32>,
    return
  }
}

</mosaic_0001>

<bundles_post_ra>
// kernel: tpu_custom_call.1
= control target key start
LH: loop header
LB: loop body
LE: loop exit
PB: predicated region body
PF: predicated region fallthrough
CT: control target
= control target key end

     0   :  { %6 = vsyncpa [#allocation3], 0  ;;  %s118_s0 = inlined_call_operand.hbm [shape: f32[8,128], index: 0, kind: input, shape index: {}]   ;;  %s119_s1 = inlined_call_operand.hbm [shape: f32[8,128], index: 1, kind: output, shape index: {}]  }
   0x1   :  { %7 = vsyncpa [#allocation4], 0  ;;  %s13_s8 = sshll.u32 %s118_s0, 4  ;;  %s99_s9 = smov [#allocation2]   ;;  %s14_s8 = int_to_ptr.hbm [resolvable:$true] %s13_s8 }
   0x2   :  { %s15_s10 = sshll.u32 %s99_s9, 4  ;;  %s16_s10 = int_to_ptr.vmem [resolvable:$true] %s15_s10 }
   0x3   :  { %18 = dma.hbm_to_vmem [thread:$0]  %s14_s8, 128, %s16_s10, [#allocation3]  }
   0x4   :  { %95 = dma.done.wait [#allocation3], 128  }
   0x5   :  { %96 = vsyncadd [#allocation3], 4294967168  ;;  %v23_v0 = vld [vmem:[#allocation2] sm:$0xff]  ;;  %s100_s11 = smov 1   ;;  %s101_s12 = smov [#allocation5]  }
   0x6   :  { %24 = vrot.lane.b32.xlu0 %v23_v0, %s100_s11  ;;  %s32_s13 = sshll.u32 %s101_s12, 4  ;;  %s34_s16 = sshll.u32 %s119_s1, 4  ;;  %s33_s13 = int_to_ptr.vmem [resolvable:$true] %s32_s13  ;;  %s35_s16 = int_to_ptr.hbm [resolvable:$true] %s34_s16 }
  0x78   :  { %v25_v1 = vpop.permute.xlu0 %24 }
  0x79   :  { %26 = vst [vmem:[#allocation5] sm:$0xff] %v25_v1 }
  0x7a   :  { %37 = dma.vmem_to_hbm [thread:$0]  %s33_s13, 128, %s35_s16, [#allocation4]  }
  0x7b   :  { %97 = dma.done.wait [#allocation4], 128  }
  0x7c   :  { %98 = vsyncadd [#allocation4], 4294967168 }
  0x7d   :  { %42 = vsyncpa [#allocation3], 1 }
  0x7e   :  { %43 = vsyncpa [#allocation4], 1 }

</bundles_post_ra>
